<compile_context>
chip_gen: v6e
topology: v6e:2x2x1
jax: 0.10.0
libtpu: 0.0.40
codegen_flags: <defaults>
</compile_context>

<pallas_src>
import jax
import jax.numpy as jnp
from jax.experimental import pallas as pl
from jax.experimental.pallas import tpu as pltpu

BN_EPS = 1e-5
_MIB = 1024 * 1024


# --------------------------------------------------------------------------
# VMEM budgeting
# --------------------------------------------------------------------------
def _vmem_budget_bytes():
    """Usable VMEM budget for this generation. Conservative 48 MiB fallback
    is safe even on v7x (64 MiB physical); v5e/v6e report 128 MiB."""
    try:
        info = pltpu.get_tpu_info()
        cap = int(getattr(info, "vmem_capacity_bytes", 0) or 0)
        if cap > 0:
            return int(cap * 3 // 4)
    except Exception:
        pass
    return 48 * _MIB


def _choose_l_tile(L, C_in, C_out, budget_bytes):
    """Byte-budgeted lane tile: large enough (~2 MiB x-block) to amortize the
    per-grid-step overhead, small enough that double-buffered x + out tiles
    stay well inside the generation's VMEM budget."""
    if L <= 256:
        return L
    bytes_per_lane = 4 * 2 * (C_in + C_out)            # x + out, double-buffered, f32
    max_lanes = max(128, (budget_bytes // 2) // bytes_per_lane)
    target_lanes = max(128, (2 * _MIB) // (4 * C_in))  # ~2 MiB x-block target
    lanes = min(max_lanes, target_lanes, L)
    if lanes >= L:
        return L
    return max(128, (lanes // 128) * 128)


# --------------------------------------------------------------------------
# Fused single-call kernel (VMEM-resident fast path)
# --------------------------------------------------------------------------
def _make_fused_kernel(N, inv_count):
    def kernel(x_ref, w1_ref, g1_ref, b1_ref, w2_ref, g2_ref, b2_ref, o_ref,
               sum1, sq1, sum2, sq2, s1, sh1, s2, sh2):
        # ---- BN1 statistics over all (n, l) --------------------------------
        sum1[...] = jnp.zeros_like(sum1)
        sq1[...] = jnp.zeros_like(sq1)

        @pl.loop(0, N)
        def _(n):
            h = jnp.dot(w1_ref[...], x_ref[n], preferred_element_type=jnp.float32)
            sum1[...] += jnp.sum(h, axis=1, keepdims=True)
            sq1[...] += jnp.sum(h * h, axis=1, keepdims=True)

        mean1 = sum1[...] * inv_count
        var1 = sq1[...] * inv_count - mean1 * mean1      # biased var (PyTorch fwd)
        sc1 = g1_ref[...] * jax.lax.rsqrt(var1 + BN_EPS)
        s1[...] = sc1
        sh1[...] = b1_ref[...] - mean1 * sc1

        # ---- BN2 statistics -------------------------------------------------
        sum2[...] = jnp.zeros_like(sum2)
        sq2[...] = jnp.zeros_like(sq2)

        @pl.loop(0, N)
        def _(n):
            h = jnp.dot(w1_ref[...], x_ref[n], preferred_element_type=jnp.float32)
            r = jnp.maximum(h * s1[...] + sh1[...], 0.0)
            y = jnp.dot(w2_ref[...], r, preferred_element_type=jnp.float32)
            sum2[...] += jnp.sum(y, axis=1, keepdims=True)
            sq2[...] += jnp.sum(y * y, axis=1, keepdims=True)

        mean2 = sum2[...] * inv_count
        var2 = sq2[...] * inv_count - mean2 * mean2
        sc2 = g2_ref[...] * jax.lax.rsqrt(var2 + BN_EPS)
        s2[...] = sc2
        sh2[...] = b2_ref[...] - mean2 * sc2

        # ---- apply: both BNs folded to per-channel FMAs ---------------------
        @pl.loop(0, N)
        def _(n):
            h = jnp.dot(w1_ref[...], x_ref[n], preferred_element_type=jnp.float32)
            r = jnp.maximum(h * s1[...] + sh1[...], 0.0)
            y = jnp.dot(w2_ref[...], r, preferred_element_type=jnp.float32)
            o_ref[n] = (y * s2[...] + sh2[...]).astype(o_ref.dtype)

    return kernel


# --------------------------------------------------------------------------
# Streaming-path kernels (per-n partial statistics; finalize done in JAX)
# --------------------------------------------------------------------------
def _make_stats1_kernel(l_tile, L, needs_mask):
    def kernel(x_ref, w1_ref, sum_ref, sumsq_ref):
        li = pl.program_id(1)

        @pl.when(li == 0)
        def _():
            sum_ref[...] = jnp.zeros_like(sum_ref)
            sumsq_ref[...] = jnp.zeros_like(sumsq_ref)

        h = jnp.dot(w1_ref[...], x_ref[...], preferred_element_type=jnp.float32)
        if needs_mask:  # tail tile: drop out-of-range lanes before accumulating
            lane = jax.lax.broadcasted_iota(jnp.int32, h.shape, 1)
            h = jnp.where(lane + li * l_tile < L, h, 0.0)
        sum_ref[...] += jnp.sum(h, axis=1, keepdims=True)
        sumsq_ref[...] += jnp.sum(h * h, axis=1, keepdims=True)

    return kernel


def _make_stats2_kernel(l_tile, L, needs_mask):
    def kernel(x_ref, w1_ref, s1_ref, sh1_ref, w2_ref, sum_ref, sumsq_ref):
        li = pl.program_id(1)

        @pl.when(li == 0)
        def _():
            sum_ref[...] = jnp.zeros_like(sum_ref)
            sumsq_ref[...] = jnp.zeros_like(sumsq_ref)

        h = jnp.dot(w1_ref[...], x_ref[...], preferred_element_type=jnp.float32)
        r = jnp.maximum(h * s1_ref[...] + sh1_ref[...], 0.0)
        y = jnp.dot(w2_ref[...], r, preferred_element_type=jnp.float32)
        if needs_mask:
            lane = jax.lax.broadcasted_iota(jnp.int32, y.shape, 1)
            y = jnp.where(lane + li * l_tile < L, y, 0.0)
        sum_ref[...] += jnp.sum(y, axis=1, keepdims=True)
        sumsq_ref[...] += jnp.sum(y * y, axis=1, keepdims=True)

    return kernel


def _apply_kernel(x_ref, w1_ref, s1_ref, sh1_ref, w2_ref, s2_ref, sh2_ref, o_ref):
    h = jnp.dot(w1_ref[...], x_ref[...], preferred_element_type=jnp.float32)
    r = jnp.maximum(h * s1_ref[...] + sh1_ref[...], 0.0)
    y = jnp.dot(w2_ref[...], r, preferred_element_type=jnp.float32)
    o_ref[...] = (y * s2_ref[...] + sh2_ref[...]).astype(o_ref.dtype)


def _fold_bn(psum, psq, gamma, beta, count):
    """Reduce per-n partials and fold BN affine to per-channel scale/shift."""
    total = jnp.sum(psum, axis=0)      # (C, 1)
    total_sq = jnp.sum(psq, axis=0)
    mean = total / count
    var = total_sq / count - mean * mean
    scale = gamma * jax.lax.rsqrt(var + BN_EPS)
    shift = beta - mean * scale
    return scale, shift


# --------------------------------------------------------------------------
# Wrapper
# --------------------------------------------------------------------------
def residual_block(x_ncl, w1, g1, b1, w2, g2, b2, *,
                   l_tile=None, fused=None, vmem_budget=None):
    """Training-mode forward of the PyTorch ResidualBlock.
    x_ncl: (N, C_in, L) float32 -> (N, C_out, L) float32."""
    N, C_in, L = x_ncl.shape
    C_mid = w1.shape[0]
    C_out = w2.shape[0]
    count = float(N * L)
    inv_count = 1.0 / count

    x_ncl = x_ncl.astype(jnp.float32)
    w1 = w1.astype(jnp.float32)
    w2 = w2.astype(jnp.float32)
    g1c = g1.reshape(C_mid, 1).astype(jnp.float32)
    b1c = b1.reshape(C_mid, 1).astype(jnp.float32)
    g2c = g2.reshape(C_out, 1).astype(jnp.float32)
    b2c = b2.reshape(C_out, 1).astype(jnp.float32)

    budget = int(vmem_budget) if vmem_budget is not None else _vmem_budget_bytes()

    x_bytes = 4 * N * C_in * L
    out_bytes = 4 * N * C_out * L
    mm1_flops = 2 * N * L * C_in * C_mid
    mm2_flops = 2 * N * L * C_mid * C_out
    weight_bytes = 4 * (C_mid * C_in + C_out * C_mid + 2 * (C_mid + C_out))

    # VMEM need of the fused path: resident x + out + weights + per-n temporaries.
    fused_need = (x_bytes + out_bytes + weight_bytes
                  + 4 * L * (C_in + 2 * C_mid + 2 * C_out) + _MIB)
    if fused is None:
        fused = fused_need <= (budget * 7) // 10

    # ---------------- FAST PATH: single VMEM-resident kernel ----------------
    if fused:
        vmem_limit = int(min(budget, max(2 * fused_need, 32 * _MIB)))
        vspec = pl.BlockSpec(memory_space=pltpu.MemorySpace.VMEM)
        return pl.pallas_call(
            _make_fused_kernel(N, inv_count),
            out_shape=jax.ShapeDtypeStruct((N, C_out, L), jnp.float32),
            in_specs=[vspec] * 7,
            out_specs=vspec,
            scratch_shapes=[pltpu.VMEM((C_mid, 1), jnp.float32)] * 2
                         + [pltpu.VMEM((C_out, 1), jnp.float32)] * 2
                         + [pltpu.VMEM((C_mid, 1), jnp.float32)] * 2
                         + [pltpu.VMEM((C_out, 1), jnp.float32)] * 2,
            compiler_params=pltpu.CompilerParams(vmem_limit_bytes=vmem_limit),
            cost_estimate=pl.CostEstimate(
                flops=3 * mm1_flops + 2 * mm2_flops + N * L * (6 * C_mid + 5 * C_out),
                transcendentals=C_mid + C_out,
                bytes_accessed=x_bytes + out_bytes),
        )(x_ncl, w1, g1c, b1c, w2, g2c, b2c)

    # ---------------- STREAMING PATH: 3 pipelined passes --------------------
    if l_tile is None:
        l_tile = _choose_l_tile(L, C_in, C_out, budget)
    assert l_tile == L or l_tile % 128 == 0, l_tile
    num_l = pl.cdiv(L, l_tile)
    needs_mask = (L % l_tile) != 0
    grid = (N, num_l)

    tile_bytes = 4 * l_tile * 2 * (C_in + C_out)       # double-buffered x + out tiles
    vmem_limit = int(min(budget, max(4 * tile_bytes, 32 * _MIB)))

    # Lane-dense (C, L_TILE) slabs straight out of NCL; batch dim squeezed.
    x_spec = pl.BlockSpec((pl.Squeezed(), C_in, l_tile), lambda n, li: (n, 0, li))
    o_spec = pl.BlockSpec((pl.Squeezed(), C_out, l_tile), lambda n, li: (n, 0, li))

    def const_spec(shape):
        return pl.BlockSpec(shape, lambda n, li: (0,) * len(shape))

    def partial_spec(c):
        # Per-n partial-sum block: resident across the L ("arbitrary") axis only.
        return pl.BlockSpec((pl.Squeezed(), c, 1), lambda n, li: (n, 0, 0))

    stats_params = pltpu.CompilerParams(
        dimension_semantics=("parallel", "arbitrary"),   # N shards across TCs on v7x
        vmem_limit_bytes=vmem_limit)

    # pass 1: per-n partial BN1 statistics
    psum1, psq1 = pl.pallas_call(
        _make_stats1_kernel(l_tile, L, needs_mask),
        grid=grid,
        in_specs=[x_spec, const_spec((C_mid, C_in))],
        out_specs=[partial_spec(C_mid), partial_spec(C_mid)],
        out_shape=[jax.ShapeDtypeStruct((N, C_mid, 1), jnp.float32)] * 2,
        compiler_params=stats_params,
        cost_estimate=pl.CostEstimate(
            flops=mm1_flops + 3 * N * L * C_mid,
            transcendentals=0,
            bytes_accessed=x_bytes),
    )(x_ncl, w1)
    scale1, shift1 = _fold_bn(psum1, psq1, g1c, b1c, count)   # tiny, plain JAX

    # pass 2: per-n partial BN2 statistics (conv1 recomputed: wash at C_mid=C_in/2)
    psum2, psq2 = pl.pallas_call(
        _make_stats2_kernel(l_tile, L, needs_mask),
        grid=grid,
        in_specs=[x_spec, const_spec((C_mid, C_in)),
                  const_spec((C_mid, 1)), const_spec((C_mid, 1)),
                  const_spec((C_out, C_mid))],
        out_specs=[partial_spec(C_out), partial_spec(C_out)],
        out_shape=[jax.ShapeDtypeStruct((N, C_out, 1), jnp.float32)] * 2,
        compiler_params=stats_params,
        cost_estimate=pl.CostEstimate(
            flops=mm1_flops + mm2_flops + N * L * (4 * C_mid + 3 * C_out),
            transcendentals=0,
            bytes_accessed=x_bytes),
    )(x_ncl, w1, scale1, shift1, w2)
    scale2, shift2 = _fold_bn(psum2, psq2, g2c, b2c, count)

    # pass 3: full pipeline with both BNs folded; fully parallel grid
    return pl.pallas_call(
        _apply_kernel,
        grid=grid,
        in_specs=[x_spec, const_spec((C_mid, C_in)),
                  const_spec((C_mid, 1)), const_spec((C_mid, 1)),
                  const_spec((C_out, C_mid)),
                  const_spec((C_out, 1)), const_spec((C_out, 1))],
        out_specs=o_spec,
        out_shape=jax.ShapeDtypeStruct((N, C_out, L), jnp.float32),
        compiler_params=pltpu.CompilerParams(
            dimension_semantics=("parallel", "parallel"),
            vmem_limit_bytes=vmem_limit),
        cost_estimate=pl.CostEstimate(
            flops=mm1_flops + mm2_flops + N * L * (4 * C_mid + 2 * C_out),
            transcendentals=0,
            bytes_accessed=x_bytes + out_bytes),
    )(x_ncl, w1, scale1, shift1, w2, scale2, shift2)


# --------------------------------------------------------------------------
# Pure-JAX reference (PyTorch training-mode forward)
# --------------------------------------------------------------------------
def residual_block_ref(x_ncl, w1, g1, b1, w2, g2, b2):
    h = jnp.einsum('mc,ncl->nml', w1, x_ncl)
    mean1 = jnp.mean(h, axis=(0, 2), keepdims=True)
    var1 = jnp.mean(jnp.square(h - mean1), axis=(0, 2), keepdims=True)
    h = (h - mean1) / jnp.sqrt(var1 + BN_EPS)
    h = h * g1[None, :, None] + b1[None, :, None]
    h = jnp.maximum(h, 0.0)
    y = jnp.einsum('om,nml->nol', w2, h)
    mean2 = jnp.mean(y, axis=(0, 2), keepdims=True)
    var2 = jnp.mean(jnp.square(y - mean2), axis=(0, 2), keepdims=True)
    y = (y - mean2) / jnp.sqrt(var2 + BN_EPS)
    return y * g2[None, :, None] + b2[None, :, None]


if __name__ == "__main__":
    # Small shapes consistent with the module (Conv1d input is (N, C, L)).
    N, C_in, C_out, L = 2, 8, 8, 512
    C_mid = C_in // 2

    key = jax.random.PRNGKey(0)
    kx, kw1, kw2, kg1, kb1, kg2, kb2 = jax.random.split(key, 7)

    x = jax.random.normal(kx, (N, C_in, L), dtype=jnp.float32)
    w1 = jax.random.normal(kw1, (C_mid, C_in), jnp.float32) * (1.0 / jnp.sqrt(C_in))
    w2 = jax.random.normal(kw2, (C_out, C_mid), jnp.float32) * (1.0 / jnp.sqrt(C_mid))
    g1 = 1.0 + 0.1 * jax.random.normal(kg1, (C_mid,), jnp.float32)
    b1 = 0.1 * jax.random.normal(kb1, (C_mid,), jnp.float32)
    g2 = 1.0 + 0.1 * jax.random.normal(kg2, (C_out,), jnp.float32)
    b2 = 0.1 * jax.random.normal(kb2, (C_out,), jnp.float32)

    ref = residual_block_ref(x, w1, g1, b1, w2, g2, b2)

    # 1) fused single-kernel VMEM-resident fast path (auto-selected at this size)
    out_fused = jax.block_until_ready(residual_block(x, w1, g1, b1, w2, g2, b2))
    # 2) streaming 3-pass path, evenly dividing tiles (grid (2, 4))
    out_stream = jax.block_until_ready(
        residual_block(x, w1, g1, b1, w2, g2, b2, fused=False, l_tile=128))
    # 3) streaming path with a non-dividing tile: exercises cdiv + tail masking
    out_tail = jax.block_until_ready(
        residual_block(x, w1, g1, b1, w2, g2, b2, fused=False, l_tile=384))

    for out in (out_fused, out_stream, out_tail):
        assert out.shape == (N, C_out, L), out.shape
        max_err = float(jnp.max(jnp.abs(out - ref)))
        assert jnp.allclose(out, ref, atol=1e-4, rtol=1e-4), max_err

    print("KERNEL_OK")
</pallas_src>

<mosaic_0001>
module attributes {stable_mosaic.version = 11 : i64} {
  func.func @kernel(%arg0: memref<2x8x512xf32, #tpu.memory_space<vmem>>, %arg1: memref<4x8xf32, #tpu.memory_space<vmem>>, %arg2: memref<4x1xf32, #tpu.memory_space<vmem>>, %arg3: memref<4x1xf32, #tpu.memory_space<vmem>>, %arg4: memref<8x4xf32, #tpu.memory_space<vmem>>, %arg5: memref<8x1xf32, #tpu.memory_space<vmem>>, %arg6: memref<8x1xf32, #tpu.memory_space<vmem>>, %arg7: memref<2x8x512xf32, #tpu.memory_space<vmem>>, %arg8: memref<4x1xf32, #tpu.memory_space<vmem>>, %arg9: memref<4x1xf32, #tpu.memory_space<vmem>>, %arg10: memref<8x1xf32, #tpu.memory_space<vmem>>, %arg11: memref<8x1xf32, #tpu.memory_space<vmem>>, %arg12: memref<4x1xf32, #tpu.memory_space<vmem>>, %arg13: memref<4x1xf32, #tpu.memory_space<vmem>>, %arg14: memref<8x1xf32, #tpu.memory_space<vmem>>, %arg15: memref<8x1xf32, #tpu.memory_space<vmem>>) attributes {dimension_semantics = [], scalar_prefetch = 0 : i64, scratch_operands = 8 : i64, tpu.core_type = #tpu.core_type<tc>} {
    %cst = arith.constant 0.000000e+00 : f32
    %0 = vector.broadcast %cst : f32 to vector<4x1xf32>
    %c0 = arith.constant 0 : index
    %c0_0 = arith.constant 0 : index
    %1 = vector.load %arg8[%c0, %c0_0] : memref<4x1xf32, #tpu.memory_space<vmem>>, vector<4x1xf32>
    tpu.vector_store %arg8[%c0, %c0_0], %0 {strides = array<i32>} : memref<4x1xf32, #tpu.memory_space<vmem>>, vector<4x1xf32>,
    %cst_1 = arith.constant 0.000000e+00 : f32
    %2 = vector.broadcast %cst_1 : f32 to vector<4x1xf32>
    %c0_2 = arith.constant 0 : index
    %c0_3 = arith.constant 0 : index
    %3 = vector.load %arg9[%c0_2, %c0_3] : memref<4x1xf32, #tpu.memory_space<vmem>>, vector<4x1xf32>
    tpu.vector_store %arg9[%c0_2, %c0_3], %2 {strides = array<i32>} : memref<4x1xf32, #tpu.memory_space<vmem>>, vector<4x1xf32>,
    %c0_i32 = arith.constant 0 : i32
    %c2_i32 = arith.constant 2 : i32
    %4 = arith.addi %c0_i32, %c2_i32 : i32
    %c1_i32 = arith.constant 1 : i32
    scf.for %arg16 = %c0_i32 to %4 step %c1_i32  : i32 {
      %c1_i32_49 = arith.constant 1 : i32
      %47 = arith.muli %arg16, %c1_i32_49 : i32
      %c0_i32_50 = arith.constant 0 : i32
      %48 = arith.addi %c0_i32_50, %47 : i32
      %c0_51 = arith.constant 0 : index
      %c0_52 = arith.constant 0 : index
      %49 = vector.load %arg1[%c0_51, %c0_52] : memref<4x8xf32, #tpu.memory_space<vmem>>, vector<4x8xf32>
      %50 = arith.index_cast %48 : i32 to index
      %c0_53 = arith.constant 0 : index
      %c0_54 = arith.constant 0 : index
      %51 = vector.load %arg0[%50, %c0_53, %c0_54] : memref<2x8x512xf32, #tpu.memory_space<vmem>>, vector<1x8x512xf32>
      %52 = vector.shape_cast %51 : vector<1x8x512xf32> to vector<8x512xf32>
      %cst_55 = arith.constant dense<0.000000e+00> : vector<4x512xf32>
      %53 = tpu.matmul %49, %52, %cst_55 {dimension_numbers = #tpu.dot_dimension_numbers<[1], [0], [0], [1], [0, 0, 1, 1], [], []>} : vector<4x8xf32>, vector<8x512xf32>, vector<4x512xf32> -> vector<4x512xf32>
      %c0_56 = arith.constant 0 : index
      %c0_57 = arith.constant 0 : index
      %54 = vector.load %arg8[%c0_56, %c0_57] : memref<4x1xf32, #tpu.memory_space<vmem>>, vector<4x1xf32>
      %cst_58 = arith.constant dense<0.000000e+00> : vector<4xf32>
      %55 = vector.multi_reduction <add>, %53, %cst_58 [1] : vector<4x512xf32> to vector<4xf32>
      %56 = vector.shape_cast %55 : vector<4xf32> to vector<4x1xf32>
      %57 = arith.addf %54, %56 : vector<4x1xf32>
      %c0_59 = arith.constant 0 : index
      %c0_60 = arith.constant 0 : index
      %58 = vector.load %arg8[%c0_59, %c0_60] : memref<4x1xf32, #tpu.memory_space<vmem>>, vector<4x1xf32>
      tpu.vector_store %arg8[%c0_59, %c0_60], %57 {strides = array<i32>} : memref<4x1xf32, #tpu.memory_space<vmem>>, vector<4x1xf32>,
      %c0_61 = arith.constant 0 : index
      %c0_62 = arith.constant 0 : index
      %59 = vector.load %arg9[%c0_61, %c0_62] : memref<4x1xf32, #tpu.memory_space<vmem>>, vector<4x1xf32>
      %60 = arith.mulf %53, %53 : vector<4x512xf32>
      %cst_63 = arith.constant dense<0.000000e+00> : vector<4xf32>
      %61 = vector.multi_reduction <add>, %60, %cst_63 [1] : vector<4x512xf32> to vector<4xf32>
      %62 = vector.shape_cast %61 : vector<4xf32> to vector<4x1xf32>
      %63 = arith.addf %59, %62 : vector<4x1xf32>
      %c0_64 = arith.constant 0 : index
      %c0_65 = arith.constant 0 : index
      %64 = vector.load %arg9[%c0_64, %c0_65] : memref<4x1xf32, #tpu.memory_space<vmem>>, vector<4x1xf32>
      tpu.vector_store %arg9[%c0_64, %c0_65], %63 {strides = array<i32>} : memref<4x1xf32, #tpu.memory_space<vmem>>, vector<4x1xf32>,
    }
    %c2_i32_4 = arith.constant 2 : i32
    %c0_5 = arith.constant 0 : index
    %c0_6 = arith.constant 0 : index
    %5 = vector.load %arg8[%c0_5, %c0_6] : memref<4x1xf32, #tpu.memory_space<vmem>>, vector<4x1xf32>
    %cst_7 = arith.constant 9.765625E-4 : f32
    %6 = vector.broadcast %cst_7 : f32 to vector<4x1xf32>
    %7 = arith.mulf %5, %6 : vector<4x1xf32>
    %c0_8 = arith.constant 0 : index
    %c0_9 = arith.constant 0 : index
    %8 = vector.load %arg9[%c0_8, %c0_9] : memref<4x1xf32, #tpu.memory_space<vmem>>, vector<4x1xf32>
    %cst_10 = arith.constant 9.765625E-4 : f32
    %9 = vector.broadcast %cst_10 : f32 to vector<4x1xf32>
    %10 = arith.mulf %8, %9 : vector<4x1xf32>
    %11 = arith.mulf %7, %7 : vector<4x1xf32>
    %12 = arith.subf %10, %11 : vector<4x1xf32>
    %c0_11 = arith.constant 0 : index
    %c0_12 = arith.constant 0 : index
    %13 = vector.load %arg2[%c0_11, %c0_12] : memref<4x1xf32, #tpu.memory_space<vmem>>, vector<4x1xf32>
    %cst_13 = arith.constant 9.99999974E-6 : f32
    %14 = vector.broadcast %cst_13 : f32 to vector<4x1xf32>
    %15 = arith.addf %12, %14 : vector<4x1xf32>
    %16 = math.rsqrt %15 : vector<4x1xf32>
    %17 = arith.mulf %13, %16 : vector<4x1xf32>
    %c0_14 = arith.constant 0 : index
    %c0_15 = arith.constant 0 : index
    %18 = vector.load %arg12[%c0_14, %c0_15] : memref<4x1xf32, #tpu.memory_space<vmem>>, vector<4x1xf32>
    tpu.vector_store %arg12[%c0_14, %c0_15], %17 {strides = array<i32>} : memref<4x1xf32, #tpu.memory_space<vmem>>, vector<4x1xf32>,
    %c0_16 = arith.constant 0 : index
    %c0_17 = arith.constant 0 : index
    %19 = vector.load %arg3[%c0_16, %c0_17] : memref<4x1xf32, #tpu.memory_space<vmem>>, vector<4x1xf32>
    %20 = arith.mulf %7, %17 : vector<4x1xf32>
    %21 = arith.subf %19, %20 : vector<4x1xf32>
    %c0_18 = arith.constant 0 : index
    %c0_19 = arith.constant 0 : index
    %22 = vector.load %arg13[%c0_18, %c0_19] : memref<4x1xf32, #tpu.memory_space<vmem>>, vector<4x1xf32>
    tpu.vector_store %arg13[%c0_18, %c0_19], %21 {strides = array<i32>} : memref<4x1xf32, #tpu.memory_space<vmem>>, vector<4x1xf32>,
    %cst_20 = arith.constant 0.000000e+00 : f32
    %23 = vector.broadcast %cst_20 : f32 to vector<8x1xf32>
    %c0_21 = arith.constant 0 : index
    %c0_22 = arith.constant 0 : index
    %24 = vector.load %arg10[%c0_21, %c0_22] : memref<8x1xf32, #tpu.memory_space<vmem>>, vector<8x1xf32>
    tpu.vector_store %arg10[%c0_21, %c0_22], %23 {strides = array<i32>} : memref<8x1xf32, #tpu.memory_space<vmem>>, vector<8x1xf32>,
    %cst_23 = arith.constant 0.000000e+00 : f32
    %25 = vector.broadcast %cst_23 : f32 to vector<8x1xf32>
    %c0_24 = arith.constant 0 : index
    %c0_25 = arith.constant 0 : index
    %26 = vector.load %arg11[%c0_24, %c0_25] : memref<8x1xf32, #tpu.memory_space<vmem>>, vector<8x1xf32>
    tpu.vector_store %arg11[%c0_24, %c0_25], %25 {strides = array<i32>} : memref<8x1xf32, #tpu.memory_space<vmem>>, vector<8x1xf32>,
    %c0_i32_26 = arith.constant 0 : i32
    %c2_i32_27 = arith.constant 2 : i32
    %27 = arith.addi %c0_i32_26, %c2_i32_27 : i32
    %c1_i32_28 = arith.constant 1 : i32
    scf.for %arg16 = %c0_i32_26 to %27 step %c1_i32_28  : i32 {
      %c1_i32_49 = arith.constant 1 : i32
      %47 = arith.muli %arg16, %c1_i32_49 : i32
      %c0_i32_50 = arith.constant 0 : i32
      %48 = arith.addi %c0_i32_50, %47 : i32
      %c0_51 = arith.constant 0 : index
      %c0_52 = arith.constant 0 : index
      %49 = vector.load %arg1[%c0_51, %c0_52] : memref<4x8xf32, #tpu.memory_space<vmem>>, vector<4x8xf32>
      %50 = arith.index_cast %48 : i32 to index
      %c0_53 = arith.constant 0 : index
      %c0_54 = arith.constant 0 : index
      %51 = vector.load %arg0[%50, %c0_53, %c0_54] : memref<2x8x512xf32, #tpu.memory_space<vmem>>, vector<1x8x512xf32>
      %52 = vector.shape_cast %51 : vector<1x8x512xf32> to vector<8x512xf32>
      %cst_55 = arith.constant dense<0.000000e+00> : vector<4x512xf32>
      %53 = tpu.matmul %49, %52, %cst_55 {dimension_numbers = #tpu.dot_dimension_numbers<[1], [0], [0], [1], [0, 0, 1, 1], [], []>} : vector<4x8xf32>, vector<8x512xf32>, vector<4x512xf32> -> vector<4x512xf32>
      %c0_56 = arith.constant 0 : index
      %c0_57 = arith.constant 0 : index
      %54 = vector.load %arg12[%c0_56, %c0_57] : memref<4x1xf32, #tpu.memory_space<vmem>>, vector<4x1xf32>
      %55 = vector.broadcast %54 : vector<4x1xf32> to vector<4x512xf32>
      %56 = arith.mulf %53, %55 : vector<4x512xf32>
      %c0_58 = arith.constant 0 : index
      %c0_59 = arith.constant 0 : index
      %57 = vector.load %arg13[%c0_58, %c0_59] : memref<4x1xf32, #tpu.memory_space<vmem>>, vector<4x1xf32>
      %58 = vector.broadcast %57 : vector<4x1xf32> to vector<4x512xf32>
      %59 = arith.addf %56, %58 : vector<4x512xf32>
      %cst_60 = arith.constant 0.000000e+00 : f32
      %60 = vector.broadcast %cst_60 : f32 to vector<4x512xf32>
      %61 = arith.maximumf %59, %60 : vector<4x512xf32>
      %c0_61 = arith.constant 0 : index
      %c0_62 = arith.constant 0 : index
      %62 = vector.load %arg4[%c0_61, %c0_62] : memref<8x4xf32, #tpu.memory_space<vmem>>, vector<8x4xf32>
      %cst_63 = arith.constant dense<0.000000e+00> : vector<8x512xf32>
      %63 = tpu.matmul %62, %61, %cst_63 {dimension_numbers = #tpu.dot_dimension_numbers<[1], [0], [0], [1], [0, 0, 1, 1], [], []>} : vector<8x4xf32>, vector<4x512xf32>, vector<8x512xf32> -> vector<8x512xf32>
      %c0_64 = arith.constant 0 : index
      %c0_65 = arith.constant 0 : index
      %64 = vector.load %arg10[%c0_64, %c0_65] : memref<8x1xf32, #tpu.memory_space<vmem>>, vector<8x1xf32>
      %cst_66 = arith.constant dense<0.000000e+00> : vector<8xf32>
      %65 = vector.multi_reduction <add>, %63, %cst_66 [1] : vector<8x512xf32> to vector<8xf32>
      %66 = vector.shape_cast %65 : vector<8xf32> to vector<8x1xf32>
      %67 = arith.addf %64, %66 : vector<8x1xf32>
      %c0_67 = arith.constant 0 : index
      %c0_68 = arith.constant 0 : index
      %68 = vector.load %arg10[%c0_67, %c0_68] : memref<8x1xf32, #tpu.memory_space<vmem>>, vector<8x1xf32>
      tpu.vector_store %arg10[%c0_67, %c0_68], %67 {strides = array<i32>} : memref<8x1xf32, #tpu.memory_space<vmem>>, vector<8x1xf32>,
      %c0_69 = arith.constant 0 : index
      %c0_70 = arith.constant 0 : index
      %69 = vector.load %arg11[%c0_69, %c0_70] : memref<8x1xf32, #tpu.memory_space<vmem>>, vector<8x1xf32>
      %70 = arith.mulf %63, %63 : vector<8x512xf32>
      %cst_71 = arith.constant dense<0.000000e+00> : vector<8xf32>
      %71 = vector.multi_reduction <add>, %70, %cst_71 [1] : vector<8x512xf32> to vector<8xf32>
      %72 = vector.shape_cast %71 : vector<8xf32> to vector<8x1xf32>
      %73 = arith.addf %69, %72 : vector<8x1xf32>
      %c0_72 = arith.constant 0 : index
      %c0_73 = arith.constant 0 : index
      %74 = vector.load %arg11[%c0_72, %c0_73] : memref<8x1xf32, #tpu.memory_space<vmem>>, vector<8x1xf32>
      tpu.vector_store %arg11[%c0_72, %c0_73], %73 {strides = array<i32>} : memref<8x1xf32, #tpu.memory_space<vmem>>, vector<8x1xf32>,
    }
    %c2_i32_29 = arith.constant 2 : i32
    %c0_30 = arith.constant 0 : index
    %c0_31 = arith.constant 0 : index
    %28 = vector.load %arg10[%c0_30, %c0_31] : memref<8x1xf32, #tpu.memory_space<vmem>>, vector<8x1xf32>
    %cst_32 = arith.constant 9.765625E-4 : f32
    %29 = vector.broadcast %cst_32 : f32 to vector<8x1xf32>
    %30 = arith.mulf %28, %29 : vector<8x1xf32>
    %c0_33 = arith.constant 0 : index
    %c0_34 = arith.constant 0 : index
    %31 = vector.load %arg11[%c0_33, %c0_34] : memref<8x1xf32, #tpu.memory_space<vmem>>, vector<8x1xf32>
    %cst_35 = arith.constant 9.765625E-4 : f32
    %32 = vector.broadcast %cst_35 : f32 to vector<8x1xf32>
    %33 = arith.mulf %31, %32 : vector<8x1xf32>
    %34 = arith.mulf %30, %30 : vector<8x1xf32>
    %35 = arith.subf %33, %34 : vector<8x1xf32>
    %c0_36 = arith.constant 0 : index
    %c0_37 = arith.constant 0 : index
    %36 = vector.load %arg5[%c0_36, %c0_37] : memref<8x1xf32, #tpu.memory_space<vmem>>, vector<8x1xf32>
    %cst_38 = arith.constant 9.99999974E-6 : f32
    %37 = vector.broadcast %cst_38 : f32 to vector<8x1xf32>
    %38 = arith.addf %35, %37 : vector<8x1xf32>
    %39 = math.rsqrt %38 : vector<8x1xf32>
    %40 = arith.mulf %36, %39 : vector<8x1xf32>
    %c0_39 = arith.constant 0 : index
    %c0_40 = arith.constant 0 : index
    %41 = vector.load %arg14[%c0_39, %c0_40] : memref<8x1xf32, #tpu.memory_space<vmem>>, vector<8x1xf32>
    tpu.vector_store %arg14[%c0_39, %c0_40], %40 {strides = array<i32>} : memref<8x1xf32, #tpu.memory_space<vmem>>, vector<8x1xf32>,
    %c0_41 = arith.constant 0 : index
    %c0_42 = arith.constant 0 : index
    %42 = vector.load %arg6[%c0_41, %c0_42] : memref<8x1xf32, #tpu.memory_space<vmem>>, vector<8x1xf32>
    %43 = arith.mulf %30, %40 : vector<8x1xf32>
    %44 = arith.subf %42, %43 : vector<8x1xf32>
    %c0_43 = arith.constant 0 : index
    %c0_44 = arith.constant 0 : index
    %45 = vector.load %arg15[%c0_43, %c0_44] : memref<8x1xf32, #tpu.memory_space<vmem>>, vector<8x1xf32>
    tpu.vector_store %arg15[%c0_43, %c0_44], %44 {strides = array<i32>} : memref<8x1xf32, #tpu.memory_space<vmem>>, vector<8x1xf32>,
    %c0_i32_45 = arith.constant 0 : i32
    %c2_i32_46 = arith.constant 2 : i32
    %46 = arith.addi %c0_i32_45, %c2_i32_46 : i32
    %c1_i32_47 = arith.constant 1 : i32
    scf.for %arg16 = %c0_i32_45 to %46 step %c1_i32_47  : i32 {
      %c1_i32_49 = arith.constant 1 : i32
      %47 = arith.muli %arg16, %c1_i32_49 : i32
      %c0_i32_50 = arith.constant 0 : i32
      %48 = arith.addi %c0_i32_50, %47 : i32
      %c0_51 = arith.constant 0 : index
      %c0_52 = arith.constant 0 : index
      %49 = vector.load %arg1[%c0_51, %c0_52] : memref<4x8xf32, #tpu.memory_space<vmem>>, vector<4x8xf32>
      %50 = arith.index_cast %48 : i32 to index
      %c0_53 = arith.constant 0 : index
      %c0_54 = arith.constant 0 : index
      %51 = vector.load %arg0[%50, %c0_53, %c0_54] : memref<2x8x512xf32, #tpu.memory_space<vmem>>, vector<1x8x512xf32>
      %52 = vector.shape_cast %51 : vector<1x8x512xf32> to vector<8x512xf32>
      %cst_55 = arith.constant dense<0.000000e+00> : vector<4x512xf32>
      %53 = tpu.matmul %49, %52, %cst_55 {dimension_numbers = #tpu.dot_dimension_numbers<[1], [0], [0], [1], [0, 0, 1, 1], [], []>} : vector<4x8xf32>, vector<8x512xf32>, vector<4x512xf32> -> vector<4x512xf32>
      %c0_56 = arith.constant 0 : index
      %c0_57 = arith.constant 0 : index
      %54 = vector.load %arg12[%c0_56, %c0_57] : memref<4x1xf32, #tpu.memory_space<vmem>>, vector<4x1xf32>
      %55 = vector.broadcast %54 : vector<4x1xf32> to vector<4x512xf32>
      %56 = arith.mulf %53, %55 : vector<4x512xf32>
      %c0_58 = arith.constant 0 : index
      %c0_59 = arith.constant 0 : index
      %57 = vector.load %arg13[%c0_58, %c0_59] : memref<4x1xf32, #tpu.memory_space<vmem>>, vector<4x1xf32>
      %58 = vector.broadcast %57 : vector<4x1xf32> to vector<4x512xf32>
      %59 = arith.addf %56, %58 : vector<4x512xf32>
      %cst_60 = arith.constant 0.000000e+00 : f32
      %60 = vector.broadcast %cst_60 : f32 to vector<4x512xf32>
      %61 = arith.maximumf %59, %60 : vector<4x512xf32>
      %c0_61 = arith.constant 0 : index
      %c0_62 = arith.constant 0 : index
      %62 = vector.load %arg4[%c0_61, %c0_62] : memref<8x4xf32, #tpu.memory_space<vmem>>, vector<8x4xf32>
      %cst_63 = arith.constant dense<0.000000e+00> : vector<8x512xf32>
      %63 = tpu.matmul %62, %61, %cst_63 {dimension_numbers = #tpu.dot_dimension_numbers<[1], [0], [0], [1], [0, 0, 1, 1], [], []>} : vector<8x4xf32>, vector<4x512xf32>, vector<8x512xf32> -> vector<8x512xf32>
      %c0_64 = arith.constant 0 : index
      %c0_65 = arith.constant 0 : index
      %64 = vector.load %arg14[%c0_64, %c0_65] : memref<8x1xf32, #tpu.memory_space<vmem>>, vector<8x1xf32>
      %65 = vector.broadcast %64 : vector<8x1xf32> to vector<8x512xf32>
      %66 = arith.mulf %63, %65 : vector<8x512xf32>
      %c0_66 = arith.constant 0 : index
      %c0_67 = arith.constant 0 : index
      %67 = vector.load %arg15[%c0_66, %c0_67] : memref<8x1xf32, #tpu.memory_space<vmem>>, vector<8x1xf32>
      %68 = vector.broadcast %67 : vector<8x1xf32> to vector<8x512xf32>
      %69 = arith.addf %66, %68 : vector<8x512xf32>
      %70 = arith.index_cast %48 : i32 to index
      %c0_68 = arith.constant 0 : index
      %c0_69 = arith.constant 0 : index
      %71 = vector.load %arg7[%70, %c0_68, %c0_69] : memref<2x8x512xf32, #tpu.memory_space<vmem>>, vector<1x8x512xf32>
      %72 = vector.shape_cast %71 : vector<1x8x512xf32> to vector<8x512xf32>
      %73 = vector.shape_cast %69 : vector<8x512xf32> to vector<1x8x512xf32>
      tpu.vector_store %arg7[%70, %c0_68, %c0_69], %73 {strides = array<i32>} : memref<2x8x512xf32, #tpu.memory_space<vmem>>, vector<1x8x512xf32>,
    }
    %c2_i32_48 = arith.constant 2 : i32
    return
  }
}

</mosaic_0001>

<bundles_post_ra>
// kernel: tpu_custom_call.1
= control target key start
LH: loop header
LB: loop body
LE: loop exit
PB: predicated region body
PF: predicated region fallthrough
CT: control target
= control target key end

     0   :  { %12 = vsyncpa [#allocation11], 0  ;;  %s1340_s0 = inlined_call_operand.hbm [shape: f32[2,8,512], index: 0, kind: input, shape index: {}]   ;;  %s1341_s1 = inlined_call_operand.vmem [shape: f32[4,8], index: 1, kind: input, shape index: {}]   ;;  %s1342_s2 = inlined_call_operand.vmem [shape: f32[4,1], index: 2, kind: input, shape index: {}]   ;;  %s1343_s3 = inlined_call_operand.vmem [shape: f32[4,1], index: 3, kind: input, shape index: {}]   ;;  %s1344_s4 = inlined_call_operand.vmem [shape: f32[8,4], index: 4, kind: input, shape index: {}]   ;;  %s1345_s5 = inlined_call_operand.vmem [shape: f32[8,1], index: 5, kind: input, shape index: {}]   ;;  %s1346_s6 = inlined_call_operand.vmem [shape: f32[8,1], index: 6, kind: input, shape index: {}]   ;;  %s1347_s7 = inlined_call_operand.hbm [shape: f32[2,8,512], index: 7, kind: output, shape index: {}]  }
   0x1   :  { %13 = vsyncpa [#allocation12], 0  ;;  %s1178_s24 = smov [#allocation10]  }
   0x2   :  { %s19_s25 = sshll.u32 %s1178_s24, 4  ;;  %s20_s25 = int_to_ptr.vmem [resolvable:$true] %s19_s25 }
   0x3   :  { %s1118_s26 = scalar_lea.vmem %s20_s25, 1024  ;;  %p1123_p1 = scmp.lt.s32.totalorder %s20_s25, %s20_s25 }
   0x4   :  { %p1119_p0 = scmp.ne.s32.totalorder %s20_s25, %s1118_s26  ;;  %p1124_p2 = scmp.lt.s32.totalorder %s1118_s26, %s1118_s26 }
   0x6   :  { %p1125_p3 = por %p1124_p2, %p1123_p1 }
   0x8   :  { %p1126_p4 = pnand %p1125_p3, %p1119_p0 }
   0xa   :  { %1129 = shalt.err (!%p1126_p4)
}
   0xb   :  { %s1179_s27 = smov 512   ;;  %s1180_s28 = smov 32  }
   0xc   :  { %25 = dma.hbm_to_vmem [thread:$0]  %s1340_s0, 1024, %s20_s25, [#allocation11], %s1179_s27, %s1179_s27, %s1180_s28  }
   0xd   :  { %1162 = dma.done.wait [#allocation11], 1024  }
   0xe   :  { %1163 = vsyncadd [#allocation11], 4294966272  ;;  %vm41_vm0 = vcmask 3072   ;;  %v1181_v0 = vmov 0.0   ;;  %s1238_s8 = smov 0  }
   0xf   :  { %42 = vst.msk [vmem:[#allocation2] sm:$0xf] %vm41_vm0, %v1181_v0  ;;  %43 = vst.msk [vmem:[#allocation3] sm:$0xf] %vm41_vm0, %v1181_v0 }
  0x10 LB: > { %v1182_v1 = vmov 0.0   ;;  %s1065_s0 = sshll.u32 %s1168_s8, 5  ;;  %v50_v2 = vld [vmem:[%s1341_s1] sm:$0xf]  ;;  %vm58_vm1 = vcmask 64512   ;;  %vm205_vm2 = vcmask 1043456   ;;  %s1168_s8 = sphi %s1238_s8, %s49_s8  }
  0x11   : > { %126 = vmatprep.mubr.f32.mxu0 %v1182_v1  ;;  %197 = vmatprep.mubr.f32.mxu1 %v1182_v1  ;;  %s53_s11 = scalar_lea.vmem [#allocation10], %s1065_s0  ;;  %s49_s8 = sadd.s32 1, %s1168_s8  }
  0x12   : > { %v55_v3 = vld [vmem:[%s53_s11 + $0x8] sm:$0xff]  ;;  %v54_v4 = vld [vmem:[%s53_s11] sm:$0xff]  ;;  %v57_v5 = vld [vmem:[%s53_s11 + $0x18] sm:$0xff]  ;;  %p46_p5 = scmp.ge.s32.totalorder %s49_s8, 2  }
  0x13   : > { %92 = vmatprep.subr.mxu0 %v55_v3  ;;  %163 = vmatprep.subr.mxu1 %v57_v5  ;;  %v56_v6 = vld [vmem:[%s53_s11 + $0x10] sm:$0xff]  ;;  %vm248_vm3 = vcmask (%p46_p5), 7168   ;;  %v239_v42 = vld [vmem:[%s1342_s2] sm:$0xf] (%p46_p5)  ;;  %s1274_s16 = smov (%p46_p5), 0  }
  0x14   : > { %93 = vmatpush1.msra.mxu0 %v54_v4  ;;  %164 = vmatpush1.msra.mxu1 %v56_v6  ;;  %249 = vst.msk [vmem:[#allocation4] sm:$0xff] (%p46_p5), %vm248_vm3, %v1181_v0  ;;  %250 = vst.msk [vmem:[#allocation5] sm:$0xff] (%p46_p5), %vm248_vm3, %v1181_v0  ;;  %v244_v45 = vld [vmem:[%s1343_s3] sm:$0xf] (%p46_p5) }
  0x15   : > { %1042 = vmatmul.mubr.msk.f32.vlgmr.msra.gmra.mxu0 %vm58_vm1, %v50_v2  ;;  %1043 = vmatmul.mubr.msk.f32.vlgmr.msra.gmra.mxu1 %vm58_vm1, %v50_v2 }
  0x16   : > { %v204_v29 = vld [vmem:[#allocation2] sm:$0xf]  ;;  %v217_v32 = vld [vmem:[#allocation3] sm:$0xf] }
  0xd5   : > { %v128_v7 = vpop.f32.mrf.mxu0  ;;  %v199_v8 = vpop.f32.mrf.mxu1 }
  0xd6   : > { %v218_v9 = vmul.f32 %v128_v7, %v128_v7  ;;  %v220_v10 = vmul.f32 %v199_v8, %v199_v8  ;;  %v206_v12 = vsel %vm205_vm2, %v128_v7, 0.0  ;;  %v209_v15 = vsel %vm205_vm2, %v199_v8, 0.0 }
  0xd7   : > { %v130_v11 = vpop.f32.mrf.mxu0  ;;  %v201_v17 = vpop.f32.mrf.mxu1 }
  0xd8   : > { %v207_v13 = vsel %vm205_vm2, %v130_v11, 0.0  ;;  %v219_v14 = vmul.f32 %v130_v11, %v130_v11  ;;  %v222_v18 = vsel %vm205_vm2, %v218_v9, 0.0  ;;  %v225_v20 = vsel %vm205_vm2, %v220_v10, 0.0 }
  0xd9   : > { %v208_v16 = vadd.f32 %v207_v13, %v206_v12  ;;  %v211_v23 = vsel %vm205_vm2, %v201_v17, 0.0  ;;  %v221_v24 = vmul.f32 %v201_v17, %v201_v17 }
  0xda   : > { %v223_v19 = vsel %vm205_vm2, %v219_v14, 0.0 }
  0xdb   : > { %v224_v21 = vadd.f32 %v223_v19, %v222_v18  ;;  %v210_v22 = vadd.f32 %v209_v15, %v208_v16  ;;  %v227_v27 = vsel %vm205_vm2, %v221_v24, 0.0 }
  0xdd   : > { %v212_v25 = vadd.f32 %v211_v23, %v210_v22  ;;  %v226_v26 = vadd.f32 %v225_v20, %v224_v21 }
  0xdf   : > { %213 = vadd.xlane.f32.xlu0 %v212_v25  ;;  %v228_v28 = vadd.f32 %v227_v27, %v226_v26 }
  0xe3   : > { %229 = vadd.xlane.f32.xlu0 %v228_v28 }
 0x168   : > { %v214_v30 = vpop.xlane.xlu0 %213 }
 0x169   : > { %v215_v31 = vadd.f32 %v214_v30, %v204_v29 }
 0x16b   : > { %216 = vst.msk [vmem:[#allocation2] sm:$0xf] %vm41_vm0, %v215_v31  ;;  %48 = sbr.rel (!%p46_p5) target bundleno = 16 (0x10), region = 77 }
 0x16c   : > { %v230_v33 = vpop.xlane.xlu0 %229 }
 0x16d   : > { %v231_v34 = vadd.f32 %v230_v33, %v217_v32 }
 0x16f   : > { %232 = vst.msk [vmem:[#allocation3] sm:$0xf] %vm41_vm0, %v231_v34 }
 0x172   :  { %v233_v35 = vld [vmem:[#allocation2] sm:$0xf] }
 0x173   :  { %v234_v37 = vmul.f32 0.0009765625, %v233_v35 }
 0x175   :  { %v237_v39 = vmul.f32 %v234_v37, %v234_v37 }
 0x176   :  { %v235_v36 = vld [vmem:[#allocation3] sm:$0xf] }
 0x177   :  { %v236_v38 = vmul.f32 0.0009765625, %v235_v36 }
 0x179   :  { %v238_v40 = vsub.f32 %v236_v38, %v237_v39 }
 0x17b   :  { %v240_v41 = vadd.f32 1e-05, %v238_v40 }
 0x17d   :  { %1103 = vrsqrt.f32 %v240_v41 }
 0x18a   :  { %v1104_v43 = vpop.eup %1103 }
 0x18b   :  { %v242_v44 = vmul.f32 %v1104_v43, %v239_v42 }
 0x18d   :  { %243 = vst.msk [vmem:[#allocation6] sm:$0xf] %vm41_vm0, %v242_v44  ;;  %v245_v46 = vmul.f32 %v242_v44, %v234_v37 }
 0x18f   :  { %v246_v47 = vsub.f32 %v244_v45, %v245_v46 }
 0x191   :  { %247 = vst.msk [vmem:[#allocation7] sm:$0xf] %vm41_vm0, %v246_v47 }
 0x192 LB: > { %v1183_v49 = vmov 0.0   ;;  %s1066_s2 = sshll.u32 %s1172_s16, 5  ;;  %v1184_v50 = vmov 0   ;;  %v257_v51 = vld [vmem:[%s1341_s1] sm:$0xf]  ;;  %vm436_vm4 = vcmask 31744   ;;  %s1172_s16 = sphi %s1274_s16, %s256_s16  }
 0x193   : > { %333 = vmatprep.mubr.f32.mxu0 %v1183_v49  ;;  %404 = vmatprep.mubr.f32.mxu1 %v1183_v49  ;;  %s260_s18 = scalar_lea.vmem [#allocation10], %s1066_s2  ;;  %v435_v11 = vld [vmem:[%s1344_s4] sm:$0xff]  ;;  %v595_v26 = vld [vmem:[#allocation4] sm:$0xff]  ;;  %v603_v29 = vld [vmem:[#allocation5] sm:$0xff]  ;;  %s256_s16 = sadd.s32 1, %s1172_s16  }
 0x194   : > { %v411_v48 = vld [vmem:[#allocation6] sm:$0xf]  ;;  %1105 = vset.pattern.permute.xlu0 %v1184_v50  ;;  %v262_v52 = vld [vmem:[%s260_s18 + $0x8] sm:$0xff]  ;;  %v261_v54 = vld [vmem:[%s260_s18] sm:$0xff]  ;;  %p253_p6 = scmp.ge.s32.totalorder %s256_s16, 2  }
 0x195   : > { %414 = vperm.xlu0 %1105, %v411_v48   ;;  %v264_v53 = vld [vmem:[%s260_s18 + $0x18] sm:$0xff]  ;;  %299 = vmatprep.subr.mxu0 %v262_v52  ;;  %v263_v55 = vld [vmem:[%s260_s18 + $0x10] sm:$0xff]  ;;  %v621_v39 = vld [vmem:[%s1345_s5] sm:$0xff] (%p253_p6)  ;;  %s1307_s25 = smov (%p253_p6), 0  }
 0x196   : > { %370 = vmatprep.subr.mxu1 %v264_v53  ;;  %300 = vmatpush1.msra.mxu0 %v261_v54  ;;  %v626_v42 = vld [vmem:[%s1346_s6] sm:$0xff] (%p253_p6) }
 0x197   : > { %371 = vmatpush1.msra.mxu1 %v263_v55  ;;  %1046 = vmatmul.mubr.msk.f32.vlgmr.msra.gmra.mxu0 %vm58_vm1, %v257_v51 }
 0x198   : > { %v421_v56 = vld [vmem:[#allocation7] sm:$0xf]  ;;  %1047 = vmatmul.mubr.msk.f32.vlgmr.msra.gmra.mxu1 %vm58_vm1, %v257_v51  ;;  %517 = vmatprep.mubr.f32.mxu0 %v1183_v49 }
 0x199   : > { %424 = vperm.xlu0 %1105, %v421_v56   ;;  %588 = vmatprep.mubr.f32.mxu1 %v1183_v49 }
 0x210   : > { %v415_v57 = vpop.permute.xlu0 %414 }
 0x214   : > { %v425_v0 = vpop.permute.xlu0 %424 }
 0x257   : > { %v335_v58 = vpop.f32.mrf.mxu0 }
 0x258   : > { %v406_v59 = vpop.f32.mrf.mxu1  ;;  %v417_v60 = vmul.f32 %v415_v57, %v335_v58 }
 0x259   : > { %v419_v61 = vmul.f32 %v415_v57, %v406_v59  ;;  %v337_v62 = vpop.f32.mrf.mxu0 }
 0x25a   : > { %v408_v63 = vpop.f32.mrf.mxu1  ;;  %v418_v1 = vmul.f32 %v415_v57, %v337_v62  ;;  %v427_v3 = vadd.f32 %v425_v0, %v417_v60 }
 0x25b   : > { %v420_v2 = vmul.f32 %v415_v57, %v408_v63  ;;  %v429_v4 = vadd.f32 %v425_v0, %v419_v61 }
 0x25c   : > { %v428_v5 = vadd.f32 %v425_v0, %v418_v1  ;;  %v431_v9 = vmax.f32 %v427_v3, 0.0 }
 0x25d   : > { %v430_v6 = vadd.f32 %v425_v0, %v420_v2  ;;  %v433_v10 = vmax.f32 %v429_v4, 0.0 }
 0x25e   : > { %v432_v7 = vmax.f32 %v428_v5, 0.0 }
 0x25f   : > { %v434_v8 = vmax.f32 %v430_v6, 0.0 }
 0x260   : > { %1048 = vmatprep.subr.msk.mxu0 %vm205_vm2, %v432_v7 }
 0x261   : > { %1051 = vmatprep.subr.msk.mxu1 %vm205_vm2, %v434_v8  ;;  %1049 = vmatpush1.msk.msra.mxu0 %vm205_vm2, %v431_v9 }
 0x262   : > { %1052 = vmatpush1.msk.msra.mxu1 %vm205_vm2, %v433_v10  ;;  %1050 = vmatmul.mubr.msk.f32.vlgmr.msra.gmra.mxu0 %vm436_vm4, %v435_v11 }
 0x263   : > { %1053 = vmatmul.mubr.msk.f32.vlgmr.msra.gmra.mxu1 %vm436_vm4, %v435_v11 }
 0x322   : > { %v519_v12 = vpop.f32.mrf.mxu0 }
 0x323   : > { %v590_v14 = vpop.f32.mrf.mxu1  ;;  %v604_v15 = vmul.f32 %v519_v12, %v519_v12 }
 0x324   : > { %v521_v13 = vpop.f32.mrf.mxu0  ;;  %v606_v18 = vmul.f32 %v590_v14, %v590_v14 }
 0x325   : > { %v596_v16 = vadd.f32 %v521_v13, %v519_v12  ;;  %v605_v17 = vmul.f32 %v521_v13, %v521_v13  ;;  %v592_v21 = vpop.f32.mrf.mxu1 }
 0x326   : > { %v607_v24 = vmul.f32 %v592_v21, %v592_v21 }
 0x327   : > { %v608_v19 = vadd.f32 %v605_v17, %v604_v15  ;;  %v597_v20 = vadd.f32 %v596_v16, %v590_v14 }
 0x329   : > { %v598_v22 = vadd.f32 %v597_v20, %v592_v21  ;;  %v609_v23 = vadd.f32 %v608_v19, %v606_v18 }
 0x32b   : > { %599 = vadd.xlane.f32.xlu1 %v598_v22  ;;  %v610_v25 = vadd.f32 %v609_v23, %v607_v24 }
 0x32f   : > { %611 = vadd.xlane.f32.xlu1 %v610_v25 }
 0x3b4   : > { %v600_v27 = vpop.xlane.xlu1 %599 }
 0x3b5   : > { %v601_v28 = vadd.f32 %v600_v27, %v595_v26 }
 0x3b7   : > { %602 = vst.msk [vmem:[#allocation4] sm:$0xff] %vm248_vm3, %v601_v28 }
 0x3b8   : > { %v612_v30 = vpop.xlane.xlu1 %611 }
 0x3b9   : > { %v613_v31 = vadd.f32 %v612_v30, %v603_v29 }
 0x3bb   : > { %614 = vst.msk [vmem:[#allocation5] sm:$0xff] %vm248_vm3, %v613_v31  ;;  %255 = sbr.rel (!%p253_p6) target bundleno = 402 (0x192), region = 88 }
 0x3be   :  { %v615_v32 = vld [vmem:[#allocation4] sm:$0xff] (%p253_p6) }
 0x3bf   :  { %v616_v34 = vmul.f32 (%p253_p6), 0.0009765625, %v615_v32 }
 0x3c1   :  { %v619_v36 = vmul.f32 %v616_v34, %v616_v34 }
 0x3c2   :  { %v617_v33 = vld [vmem:[#allocation5] sm:$0xff] }
 0x3c3   :  { %v618_v35 = vmul.f32 0.0009765625, %v617_v33 }
 0x3c5   :  { %v620_v37 = vsub.f32 %v618_v35, %v619_v36 }
 0x3c7   :  { %v622_v38 = vadd.f32 1e-05, %v620_v37 }
 0x3c9   :  { %1106 = vrsqrt.f32 %v622_v38 }
 0x3d6   :  { %v1107_v40 = vpop.eup %1106 }
 0x3d7   :  { %v624_v41 = vmul.f32 %v1107_v40, %v621_v39 }
 0x3d9   :  { %625 = vst.msk [vmem:[#allocation8] sm:$0xff] %vm248_vm3, %v624_v41  ;;  %v627_v43 = vmul.f32 %v624_v41, %v616_v34 }
 0x3db   :  { %v628_v44 = vsub.f32 %v626_v42, %v627_v43 }
 0x3dd   :  { %629 = vst.msk [vmem:[#allocation9] sm:$0xff] %vm248_vm3, %v628_v44 }
 0x3de LB: > { %v790_v45 = vld [vmem:[#allocation6] sm:$0xf]  ;;  %v1185_v46 = vmov 0.0   ;;  %s1067_s5 = sshll.u32 %s1176_s25, 5  ;;  %v1186_v47 = vmov 0   ;;  %v814_v10 = vld [vmem:[%s1344_s4] sm:$0xff]  ;;  %s1176_s25 = sphi %s1307_s25, %s635_s25  }
 0x3df   : > { %712 = vmatprep.mubr.f32.mxu0 %v1185_v46  ;;  %783 = vmatprep.mubr.f32.mxu1 %v1185_v46  ;;  %v636_v48 = vld [vmem:[%s1341_s1] sm:$0xf]  ;;  %s639_s29 = scalar_lea.vmem [#allocation10], %s1067_s5  ;;  %v800_v53 = vld [vmem:[#allocation7] sm:$0xf]  ;;  %s995_s0 = scalar_lea.vmem [#allocation13], %s1067_s5 }
 0x3e0   : > { %1108 = vset.pattern.permute.xlu0 %v1186_v47  ;;  %1109 = vset.pattern.permute.xlu1 %v1186_v47  ;;  %v641_v49 = vld [vmem:[%s639_s29 + $0x8] sm:$0xff]  ;;  %v643_v50 = vld [vmem:[%s639_s29 + $0x18] sm:$0xff]  ;;  %v640_v51 = vld [vmem:[%s639_s29] sm:$0xff]  ;;  %s635_s25 = sadd.s32 1, %s1176_s25  }
 0x3e1   : > { %793 = vperm.xlu0 %1108, %v790_v45   ;;  %678 = vmatprep.subr.mxu0 %v641_v49  ;;  %v642_v52 = vld [vmem:[%s639_s29 + $0x10] sm:$0xff]  ;;  %v974_v54 = vld [vmem:[#allocation8] sm:$0xff]  ;;  %p632_p7 = scmp.ge.s32.totalorder %s635_s25, 2  }
 0x3e2   : > { %749 = vmatprep.subr.mxu1 %v643_v50  ;;  %679 = vmatpush1.msra.mxu0 %v640_v51  ;;  %s1187_s9 = smov (%p632_p7), [#allocation13]  }
 0x3e3   : > { %750 = vmatpush1.msra.mxu1 %v642_v52  ;;  %1056 = vmatmul.mubr.msk.f32.vlgmr.msra.gmra.mxu0 %vm58_vm1, %v636_v48  ;;  %s1005_s10 = sshll.u32 (%p632_p7), %s1187_s9, 4  ;;  %s1006_s10 = int_to_ptr.vmem [resolvable:$true] %s1005_s10 }
 0x3e4   : > { %1057 = vmatmul.mubr.msk.f32.vlgmr.msra.gmra.mxu1 %vm58_vm1, %v636_v48  ;;  %896 = vmatprep.mubr.f32.mxu0 %v1185_v46  ;;  %v984_v55 = vld [vmem:[#allocation9] sm:$0xff]  ;;  %s1130_s11 = scalar_lea.vmem (%p632_p7), %s1006_s10, 1024  ;;  %p1135_p9 = scmp.lt.s32.totalorder (%p632_p7), %s1006_s10, %s1006_s10 }
 0x3e5   : > { %803 = vperm.xlu0 %1108, %v800_v53   ;;  %967 = vmatprep.mubr.f32.mxu1 %v1185_v46  ;;  %p1131_p8 = scmp.ne.s32.totalorder (%p632_p7), %s1006_s10, %s1130_s11  ;;  %p1136_p10 = scmp.lt.s32.totalorder (%p632_p7), %s1130_s11, %s1130_s11 }
 0x3e6   : > { %977 = vperm.xlu1 %1109, %v974_v54  }
 0x3e7   :  { %p1137_p11 = por (%p632_p7), %p1136_p10, %p1135_p9 }
 0x3e9   :  { %p1138_p12 = pnand (%p632_p7), %p1137_p11, %p1131_p8 }
 0x3ea   : > { %987 = vperm.xlu1 %1109, %v984_v55  }
 0x45c   : > { %v794_v56 = vpop.permute.xlu0 %793 }
 0x460   : > { %v804_v63 = vpop.permute.xlu0 %803 }
 0x461   : > { %v978_v11 = vpop.permute.xlu1 %977 }
 0x465   : > { %v988_v16 = vpop.permute.xlu1 %987 }
 0x4a3   : > { %v714_v57 = vpop.f32.mrf.mxu0 }
 0x4a4   : > { %v785_v58 = vpop.f32.mrf.mxu1  ;;  %v796_v59 = vmul.f32 %v794_v56, %v714_v57 }
 0x4a5   : > { %v798_v60 = vmul.f32 %v794_v56, %v785_v58  ;;  %v716_v61 = vpop.f32.mrf.mxu0 }
 0x4a6   : > { %v787_v62 = vpop.f32.mrf.mxu1  ;;  %v797_v0 = vmul.f32 %v794_v56, %v716_v61  ;;  %v806_v2 = vadd.f32 %v804_v63, %v796_v59 }
 0x4a7   : > { %v799_v1 = vmul.f32 %v794_v56, %v787_v62  ;;  %v808_v3 = vadd.f32 %v804_v63, %v798_v60 }
 0x4a8   : > { %v807_v4 = vadd.f32 %v804_v63, %v797_v0  ;;  %v810_v8 = vmax.f32 %v806_v2, 0.0 }
 0x4a9   : > { %v809_v5 = vadd.f32 %v804_v63, %v799_v1  ;;  %v812_v9 = vmax.f32 %v808_v3, 0.0 }
 0x4aa   : > { %v811_v6 = vmax.f32 %v807_v4, 0.0 }
 0x4ab   : > { %v813_v7 = vmax.f32 %v809_v5, 0.0 }
 0x4ac   : > { %1058 = vmatprep.subr.msk.mxu0 %vm205_vm2, %v811_v6 }
 0x4ad   : > { %1061 = vmatprep.subr.msk.mxu1 %vm205_vm2, %v813_v7  ;;  %1059 = vmatpush1.msk.msra.mxu0 %vm205_vm2, %v810_v8 }
 0x4ae   : > { %1062 = vmatpush1.msk.msra.mxu1 %vm205_vm2, %v812_v9  ;;  %1060 = vmatmul.mubr.msk.f32.vlgmr.msra.gmra.mxu0 %vm436_vm4, %v814_v10 }
 0x4af   : > { %1063 = vmatmul.mubr.msk.f32.vlgmr.msra.gmra.mxu1 %vm436_vm4, %v814_v10 }
 0x56e   : > { %v898_v12 = vpop.f32.mrf.mxu0 }
 0x56f   : > { %v969_v13 = vpop.f32.mrf.mxu1  ;;  %v980_v14 = vmul.f32 %v978_v11, %v898_v12 }
 0x570   : > { %v982_v15 = vmul.f32 %v978_v11, %v969_v13  ;;  %v900_v17 = vpop.f32.mrf.mxu0 }
 0x571   : > { %v971_v18 = vpop.f32.mrf.mxu1  ;;  %v981_v19 = vmul.f32 %v978_v11, %v900_v17  ;;  %v990_v21 = vadd.f32 %v988_v16, %v980_v14 }
 0x572   : > { %v983_v20 = vmul.f32 %v978_v11, %v971_v18  ;;  %v992_v22 = vadd.f32 %v988_v16, %v982_v15  ;;  %634 = sbr.rel (!%p632_p7) target bundleno = 990 (0x3de), region = 99 }
 0x573   : > { %v991_v23 = vadd.f32 %v988_v16, %v981_v19  ;;  %996 = vst [vmem:[%s995_s0] sm:$0xff] %v990_v21 }
 0x574   : > { %v993_v24 = vadd.f32 %v988_v16, %v983_v20  ;;  %998 = vst [vmem:[%s995_s0 + $0x10] sm:$0xff] %v992_v22 }
 0x575   : > { %997 = vst [vmem:[%s995_s0 + $0x8] sm:$0xff] %v991_v23 }
 0x576   : > { %999 = vst [vmem:[%s995_s0 + $0x18] sm:$0xff] %v993_v24 }
 0x577   :  { %1141 = shalt.err (!%p1138_p12)
}
 0x578   :  { %1011 = dma.vmem_to_hbm [thread:$0]  %s1006_s10, 1024, %s1347_s7, [#allocation12], %s1179_s27, %s1179_s27, %s1180_s28  }
 0x579   :  { %1164 = dma.done.wait [#allocation12], 1024  }
 0x57a   :  { %1165 = vsyncadd [#allocation12], 4294966272 }
 0x57b   :  { %1015 = vsyncpa [#allocation11], 1 }
 0x57c   :  { %1016 = vsyncpa [#allocation12], 1 }

</bundles_post_ra>
